<compile_context>
chip_gen: v7x
topology: tpu7x:2x2x1
jax: 0.10.0
libtpu: 0.0.40
codegen_flags: <defaults>
</compile_context>

<pallas_src>
import functools

import jax
import jax.numpy as jnp
from jax.experimental import pallas as pl
from jax.experimental.pallas import tpu as pltpu


def _residual_kernel(x_ref, w1r_ref, w2t_ref, o_ref, xp_ref, patch_ref,
                     *, width, matmul_dtype):
    """Processes one block of `nb` images.

    x_ref    : (nb, Cin,  H*W)        raw f32 input (NCHW flattened spatially)
    w1r_ref  : (Crh, 9*Cin)           3x3 weights, rows = out-channel,
                                      cols ordered (tap k major, in-ch minor)
    w2t_ref  : (Cout, Crh)            1x1 weights (transposed)
    o_ref    : (nb, Cout, H*W)
    xp_ref   : (Cin, H*W + 2*pad)     persistent padded ReLU(x) slab (scratch)
    patch_ref: (9*Cin, H*W)           persistent im2col patch (scratch)
    """
    nb, cin, hw = x_ref.shape
    w = width
    pad = (xp_ref.shape[1] - hw) // 2          # 128-aligned, >= w + 1

    # Zero the lane-aligned pad columns (cheap; done each step for megacore
    # safety -- the middle is rewritten per image, pads stay zero).
    xp_ref[:, :pad] = jnp.zeros((cin, pad), xp_ref.dtype)
    xp_ref[:, pad + hw:] = jnp.zeros((cin, pad), xp_ref.dtype)

    # Column-validity masks for the +-1 horizontal taps (they wrap between
    # image rows in the flattened layout).  Vertical (+-W) taps fall into the
    # true zero padding, which is already the correct conv boundary behaviour.
    col = jax.lax.broadcasted_iota(jnp.int32, (1, hw), 1) % w
    mask_left = col >= 1            # dx == -1
    mask_right = col <= (w - 2)     # dx == +1

    w1r = w1r_ref[...].astype(matmul_dtype)    # (Crh, 9*Cin)
    w2t = w2t_ref[...].astype(matmul_dtype)    # (Cout, Crh)

    for n in range(nb):
        x_n = x_ref[n]                                         # (cin, hw) raw f32
        # ReLU(x) into the lane-aligned middle of the slab (unmasked store).
        xp_ref[:, pad:pad + hw] = jnp.maximum(x_n, 0.0).astype(xp_ref.dtype)

        # Build the im2col patch directly in scratch: each tap is loaded from
        # the slab and stored exactly once (single materialization).
        k = 0
        for dy in (-1, 0, 1):
            for dx in (-1, 0, 1):
                start = pad + dy * w + dx
                s = xp_ref[:, start:start + hw]                # (cin, hw)
                if dx == -1:
                    s = jnp.where(mask_left, s, 0.0)
                elif dx == 1:
                    s = jnp.where(mask_right, s, 0.0)
                patch_ref[k * cin:(k + 1) * cin, :] = s.astype(patch_ref.dtype)
                k += 1

        # Single K = 9*Cin matmul for the 3x3 conv, then the 1x1 conv.
        h1 = jnp.maximum(
            jnp.dot(w1r, patch_ref[...], preferred_element_type=jnp.float32),
            0.0)                                               # (Crh, hw) f32
        y = jnp.dot(w2t, h1.astype(matmul_dtype),
                    preferred_element_type=jnp.float32)        # (Cout, hw) f32
        o_ref[n] = (x_n + y).astype(o_ref.dtype)               # residual on raw x


def _vmem_bytes_estimate(nb, cin, cout, crh, hw, pad, mm_itemsize):
    f32 = 4
    io_blocks = 2 * nb * cin * hw * f32 + 2 * nb * cout * hw * f32  # double-buffered
    weights = 2 * (crh * 9 * cin + cout * crh) * f32
    slab = cin * (hw + 2 * pad) * mm_itemsize                       # scratch
    patch = 9 * cin * hw * mm_itemsize                              # scratch
    live = (2 * cin + crh + cout) * hw * f32                        # x_n, relu, h1, y
    return io_blocks + weights + slab + patch + live


def _pick_images_per_block(n, cin, cout, crh, hw, pad, mm_itemsize,
                           cap=8, vmem_budget_bytes=40 << 20):
    """Largest divisor of n that fits the VMEM budget, preferring >=4 grid
    steps (>=2 per TensorCore on megacore parts), then >=2, then any."""
    divisors = [d for d in range(1, min(n, cap) + 1) if n % d == 0]
    fitting = [d for d in divisors
               if _vmem_bytes_estimate(d, cin, cout, crh, hw, pad,
                                       mm_itemsize) <= vmem_budget_bytes]
    if not fitting:
        # TODO(synk): add a second grid axis tiling hw (halo read from the padded
        # slab) for shapes where even a single image exceeds the VMEM budget.
        fitting = [1]
    for min_steps in (4, 2, 1):
        cand = [d for d in fitting if n // d >= min_steps]
        if cand:
            return max(cand)
    return max(fitting)


def prepare_residual_params(w1, w2):
    """One-time weight re-layout -- do this at parameter-init time, not per call.

    w1: (3, 3, Cin, Crh) HWIO  ->  w1r: (Crh, 9*Cin), cols = (tap k, in-ch c)
    w2: (Crh, Cout)            ->  w2t: (Cout, Crh)
    """
    kh, kw, cin, crh = w1.shape
    assert (kh, kw) == (3, 3)
    w1r = jnp.transpose(w1.reshape(9, cin, crh), (2, 0, 1)).reshape(crh, 9 * cin)
    w2t = jnp.transpose(w2, (1, 0))
    return w1r, w2t


@functools.partial(jax.jit, static_argnames=("matmul_dtype",))
def residual_forward(x_nchw, w1r, w2t, *, matmul_dtype=jnp.bfloat16):
    """x: (N, Cin, H, W); w1r/w2t from prepare_residual_params. Returns NCHW."""
    n, cin, h, w = x_nchw.shape
    crh = w1r.shape[0]
    cout = w2t.shape[0]
    if w1r.shape[1] != 9 * cin:
        raise ValueError("w1r layout mismatch")
    if cin != cout:
        raise ValueError("Residual add requires in_channels == num_hiddens")
    hw = h * w
    if hw % 128 != 0:
        # TODO(synk): pad the flattened spatial axis to a 128 multiple and mask.
        raise ValueError("H*W must be a multiple of 128 for lane-dense blocks")
    if cin % 8 != 0:
        raise ValueError("in_channels must be a multiple of 8")

    pad = ((w + 1 + 127) // 128) * 128          # lane-aligned zero pad per side
    mm_itemsize = jnp.dtype(matmul_dtype).itemsize

    # Free trailing-dim reshape only: no transposes, no padding in HBM.
    x_flat = x_nchw.reshape(n, cin, hw)

    nb = _pick_images_per_block(n, cin, cout, crh, hw, pad, mm_itemsize)
    est = _vmem_bytes_estimate(nb, cin, cout, crh, hw, pad, mm_itemsize)
    vmem_limit = int(min(64 << 20, max(32 << 20, est + est // 2)))

    out_flat = pl.pallas_call(
        functools.partial(_residual_kernel, width=w, matmul_dtype=matmul_dtype),
        out_shape=jax.ShapeDtypeStruct((n, cout, hw), x_nchw.dtype),
        grid_spec=pltpu.PrefetchScalarGridSpec(
            num_scalar_prefetch=0,
            grid=(n // nb,),
            in_specs=[
                pl.BlockSpec((nb, cin, hw), lambda i: (i, 0, 0)),
                pl.BlockSpec((crh, 9 * cin), lambda i: (0, 0)),
                pl.BlockSpec((cout, crh), lambda i: (0, 0)),
            ],
            out_specs=pl.BlockSpec((nb, cout, hw), lambda i: (i, 0, 0)),
            scratch_shapes=[
                pltpu.VMEM((cin, hw + 2 * pad), matmul_dtype),  # padded ReLU slab
                pltpu.VMEM((9 * cin, hw), matmul_dtype),        # im2col patch
            ],
        ),
        compiler_params=pltpu.CompilerParams(
            dimension_semantics=("parallel",),
            vmem_limit_bytes=vmem_limit,
        ),
    )(x_flat, w1r, w2t)

    return out_flat.reshape(n, cout, h, w)


def reference_forward(x_nchw, w1, w2):
    """Pure-JAX reference matching the PyTorch module semantics."""
    x = jnp.transpose(x_nchw, (0, 2, 3, 1))              # NHWC
    h = jax.nn.relu(x)
    h = jax.lax.conv_general_dilated(
        h, w1, window_strides=(1, 1), padding="SAME",
        dimension_numbers=("NHWC", "HWIO", "NHWC"))
    h = jax.nn.relu(h)
    h = jax.lax.conv_general_dilated(
        h, w2[None, None, :, :], window_strides=(1, 1), padding="VALID",
        dimension_numbers=("NHWC", "HWIO", "NHWC"))
    return jnp.transpose(x + h, (0, 3, 1, 2))


if __name__ == "__main__":
    # Small shapes consistent with the module: in_channels == num_hiddens so
    # the residual add is well-defined (as in VQVAE usage).
    N, H, W = 2, 16, 16
    in_channels = 32
    num_hiddens = 32
    num_residual_hiddens = 8

    key = jax.random.PRNGKey(0)
    kx, kw1, kw2 = jax.random.split(key, 3)

    x = jax.random.normal(kx, (N, in_channels, H, W), dtype=jnp.float32)
    w1 = 0.1 * jax.random.normal(
        kw1, (3, 3, in_channels, num_residual_hiddens), dtype=jnp.float32)
    w2 = 0.1 * jax.random.normal(
        kw2, (num_residual_hiddens, num_hiddens), dtype=jnp.float32)

    # One-time weight re-layout (parameter-init time, not per forward call).
    w1r, w2t = prepare_residual_params(w1, w2)
    ref = reference_forward(x, w1, w2)

    # Exact-numerics path (f32 matmuls): must match the reference tightly.
    out_f32 = residual_forward(x, w1r, w2t, matmul_dtype=jnp.float32)
    jax.block_until_ready(out_f32)
    assert out_f32.shape == (N, num_hiddens, H, W)
    assert jnp.allclose(out_f32, ref, rtol=1e-4, atol=1e-4), "f32 mismatch"

    # Default fast path: bf16 operands into the MXU, f32 accumulation.
    out_bf16 = residual_forward(x, w1r, w2t)
    jax.block_until_ready(out_bf16)
    assert out_bf16.shape == (N, num_hiddens, H, W)
    assert jnp.allclose(out_bf16, ref, rtol=1e-2, atol=1e-2), "bf16 mismatch"

    print("KERNEL_OK")
</pallas_src>

<mosaic_0001>
module attributes {stable_mosaic.version = 11 : i64} {
  func.func @_residual_kernel(%arg0: i32, %arg1: memref<1x32x256xf32, #tpu.memory_space<vmem>>, %arg2: memref<8x288xf32, #tpu.memory_space<vmem>>, %arg3: memref<32x8xf32, #tpu.memory_space<vmem>>, %arg4: memref<1x32x256xf32, #tpu.memory_space<vmem>>, %arg5: memref<32x512xf32, #tpu.memory_space<vmem>>, %arg6: memref<288x256xf32, #tpu.memory_space<vmem>>) attributes {dimension_semantics = [#tpu.dimension_semantics<parallel>], iteration_bounds = array<i64: 2>, scalar_prefetch = 0 : i64, scratch_operands = 2 : i64, tpu.core_type = #tpu.core_type<tc>, window_params = [{transform_indices = @transform_0, window_bounds = array<i64: 1, 32, 256>}, {pipeline_mode = #tpu.pipeline_mode<synchronous>, transform_indices = @transform_1, window_bounds = array<i64: 8, 288>}, {pipeline_mode = #tpu.pipeline_mode<synchronous>, transform_indices = @transform_2, window_bounds = array<i64: 32, 8>}, {transform_indices = @transform_3, window_bounds = array<i64: 1, 32, 256>}]} {
    %cst = arith.constant 0.000000e+00 : f32
    %0 = vector.broadcast %cst : f32 to vector<32x128xf32>
    %c0 = arith.constant 0 : index
    %c0_0 = arith.constant 0 : index
    %1 = vector.load %arg5[%c0, %c0_0] : memref<32x512xf32, #tpu.memory_space<vmem>>, vector<32x128xf32>
    tpu.vector_store %arg5[%c0, %c0_0], %0 {strides = array<i32>} : memref<32x512xf32, #tpu.memory_space<vmem>>, vector<32x128xf32>,
    %cst_1 = arith.constant 0.000000e+00 : f32
    %2 = vector.broadcast %cst_1 : f32 to vector<32x128xf32>
    %c0_2 = arith.constant 0 : index
    %c384 = arith.constant 384 : index
    %3 = vector.load %arg5[%c0_2, %c384] : memref<32x512xf32, #tpu.memory_space<vmem>>, vector<32x128xf32>
    tpu.vector_store %arg5[%c0_2, %c384], %2 {strides = array<i32>} : memref<32x512xf32, #tpu.memory_space<vmem>>, vector<32x128xf32>,
    %4 = tpu.iota {dimensions = array<i32: 1>} : vector<1x256xi32>
    %c16_i32 = arith.constant 16 : i32
    %c0_i32 = arith.constant 0 : i32
    %5 = arith.cmpi eq, %c16_i32, %c0_i32 : i32
    %c1_i32 = arith.constant 1 : i32
    %6 = arith.select %5, %c1_i32, %c16_i32 : i32
    %7 = vector.broadcast %6 : i32 to vector<1x256xi32>
    %8 = arith.remsi %4, %7 : vector<1x256xi32>
    %c0_i32_3 = arith.constant 0 : i32
    %9 = vector.broadcast %c0_i32_3 : i32 to vector<1x256xi32>
    %10 = arith.cmpi ne, %8, %9 : vector<1x256xi32>
    %c0_i32_4 = arith.constant 0 : i32
    %11 = vector.broadcast %c0_i32_4 : i32 to vector<1x256xi32>
    %12 = arith.cmpi slt, %8, %11 : vector<1x256xi32>
    %c0_i32_5 = arith.constant 0 : i32
    %13 = arith.cmpi slt, %6, %c0_i32_5 : i32
    %14 = vector.broadcast %13 : i1 to vector<1x256xi1>
    %15 = vector.broadcast %14 : vector<1x256xi1> to vector<1x256xi1>
    %16 = arith.xori %12, %15 : vector<1x256xi1>
    %17 = arith.andi %16, %10 : vector<1x256xi1>
    %18 = vector.broadcast %6 : i32 to vector<1x256xi32>
    %19 = arith.addi %8, %18 : vector<1x256xi32>
    %20 = arith.select %17, %19, %8 : vector<1x256xi1>, vector<1x256xi32>
    %c1_i32_6 = arith.constant 1 : i32
    %21 = vector.broadcast %c1_i32_6 : i32 to vector<1x256xi32>
    %22 = arith.cmpi sge, %20, %21 : vector<1x256xi32>
    %c14_i32 = arith.constant 14 : i32
    %23 = vector.broadcast %c14_i32 : i32 to vector<1x256xi32>
    %24 = arith.cmpi sle, %20, %23 : vector<1x256xi32>
    %c0_7 = arith.constant 0 : index
    %c0_8 = arith.constant 0 : index
    %25 = vector.load %arg2[%c0_7, %c0_8] : memref<8x288xf32, #tpu.memory_space<vmem>>, vector<8x288xf32>
    %c0_9 = arith.constant 0 : index
    %c0_10 = arith.constant 0 : index
    %26 = vector.load %arg3[%c0_9, %c0_10] : memref<32x8xf32, #tpu.memory_space<vmem>>, vector<32x8xf32>
    %c0_11 = arith.constant 0 : index
    %c0_12 = arith.constant 0 : index
    %c0_13 = arith.constant 0 : index
    %27 = vector.load %arg1[%c0_11, %c0_12, %c0_13] : memref<1x32x256xf32, #tpu.memory_space<vmem>>, vector<1x32x256xf32>
    %28 = vector.shape_cast %27 : vector<1x32x256xf32> to vector<32x256xf32>
    %cst_14 = arith.constant 0.000000e+00 : f32
    %29 = vector.broadcast %cst_14 : f32 to vector<32x256xf32>
    %30 = arith.maximumf %28, %29 : vector<32x256xf32>
    %c0_15 = arith.constant 0 : index
    %c128 = arith.constant 128 : index
    %31 = vector.load %arg5[%c0_15, %c128] : memref<32x512xf32, #tpu.memory_space<vmem>>, vector<32x256xf32>
    tpu.vector_store %arg5[%c0_15, %c128], %30 {strides = array<i32>} : memref<32x512xf32, #tpu.memory_space<vmem>>, vector<32x256xf32>,
    %c0_16 = arith.constant 0 : index
    %c111 = arith.constant 111 : index
    %32 = vector.load %arg5[%c0_16, %c111] : memref<32x512xf32, #tpu.memory_space<vmem>>, vector<32x256xf32>
    %cst_17 = arith.constant 0.000000e+00 : f32
    %33 = vector.shape_cast %22 : vector<1x256xi1> to vector<1x256xi1>
    %34 = vector.broadcast %33 : vector<1x256xi1> to vector<32x256xi1>
    %35 = vector.broadcast %cst_17 : f32 to vector<32x256xf32>
    %36 = arith.select %34, %32, %35 : vector<32x256xi1>, vector<32x256xf32>
    %c0_18 = arith.constant 0 : index
    %c0_19 = arith.constant 0 : index
    %37 = vector.load %arg6[%c0_18, %c0_19] : memref<288x256xf32, #tpu.memory_space<vmem>>, vector<32x256xf32>
    tpu.vector_store %arg6[%c0_18, %c0_19], %36 {strides = array<i32>} : memref<288x256xf32, #tpu.memory_space<vmem>>, vector<32x256xf32>,
    %c0_20 = arith.constant 0 : index
    %c112 = arith.constant 112 : index
    %38 = vector.load %arg5[%c0_20, %c112] : memref<32x512xf32, #tpu.memory_space<vmem>>, vector<32x256xf32>
    %c32 = arith.constant 32 : index
    %c0_21 = arith.constant 0 : index
    %39 = vector.load %arg6[%c32, %c0_21] : memref<288x256xf32, #tpu.memory_space<vmem>>, vector<32x256xf32>
    tpu.vector_store %arg6[%c32, %c0_21], %38 {strides = array<i32>} : memref<288x256xf32, #tpu.memory_space<vmem>>, vector<32x256xf32>,
    %c0_22 = arith.constant 0 : index
    %c113 = arith.constant 113 : index
    %40 = vector.load %arg5[%c0_22, %c113] : memref<32x512xf32, #tpu.memory_space<vmem>>, vector<32x256xf32>
    %cst_23 = arith.constant 0.000000e+00 : f32
    %41 = vector.shape_cast %24 : vector<1x256xi1> to vector<1x256xi1>
    %42 = vector.broadcast %41 : vector<1x256xi1> to vector<32x256xi1>
    %43 = vector.broadcast %cst_23 : f32 to vector<32x256xf32>
    %44 = arith.select %42, %40, %43 : vector<32x256xi1>, vector<32x256xf32>
    %c64 = arith.constant 64 : index
    %c0_24 = arith.constant 0 : index
    %45 = vector.load %arg6[%c64, %c0_24] : memref<288x256xf32, #tpu.memory_space<vmem>>, vector<32x256xf32>
    tpu.vector_store %arg6[%c64, %c0_24], %44 {strides = array<i32>} : memref<288x256xf32, #tpu.memory_space<vmem>>, vector<32x256xf32>,
    %c0_25 = arith.constant 0 : index
    %c127 = arith.constant 127 : index
    %46 = vector.load %arg5[%c0_25, %c127] : memref<32x512xf32, #tpu.memory_space<vmem>>, vector<32x256xf32>
    %cst_26 = arith.constant 0.000000e+00 : f32
    %47 = vector.shape_cast %22 : vector<1x256xi1> to vector<1x256xi1>
    %48 = vector.broadcast %47 : vector<1x256xi1> to vector<32x256xi1>
    %49 = vector.broadcast %cst_26 : f32 to vector<32x256xf32>
    %50 = arith.select %48, %46, %49 : vector<32x256xi1>, vector<32x256xf32>
    %c96 = arith.constant 96 : index
    %c0_27 = arith.constant 0 : index
    %51 = vector.load %arg6[%c96, %c0_27] : memref<288x256xf32, #tpu.memory_space<vmem>>, vector<32x256xf32>
    tpu.vector_store %arg6[%c96, %c0_27], %50 {strides = array<i32>} : memref<288x256xf32, #tpu.memory_space<vmem>>, vector<32x256xf32>,
    %c0_28 = arith.constant 0 : index
    %c128_29 = arith.constant 128 : index
    %52 = vector.load %arg5[%c0_28, %c128_29] : memref<32x512xf32, #tpu.memory_space<vmem>>, vector<32x256xf32>
    %c128_30 = arith.constant 128 : index
    %c0_31 = arith.constant 0 : index
    %53 = vector.load %arg6[%c128_30, %c0_31] : memref<288x256xf32, #tpu.memory_space<vmem>>, vector<32x256xf32>
    tpu.vector_store %arg6[%c128_30, %c0_31], %52 {strides = array<i32>} : memref<288x256xf32, #tpu.memory_space<vmem>>, vector<32x256xf32>,
    %c0_32 = arith.constant 0 : index
    %c129 = arith.constant 129 : index
    %54 = vector.load %arg5[%c0_32, %c129] : memref<32x512xf32, #tpu.memory_space<vmem>>, vector<32x256xf32>
    %cst_33 = arith.constant 0.000000e+00 : f32
    %55 = vector.shape_cast %24 : vector<1x256xi1> to vector<1x256xi1>
    %56 = vector.broadcast %55 : vector<1x256xi1> to vector<32x256xi1>
    %57 = vector.broadcast %cst_33 : f32 to vector<32x256xf32>
    %58 = arith.select %56, %54, %57 : vector<32x256xi1>, vector<32x256xf32>
    %c160 = arith.constant 160 : index
    %c0_34 = arith.constant 0 : index
    %59 = vector.load %arg6[%c160, %c0_34] : memref<288x256xf32, #tpu.memory_space<vmem>>, vector<32x256xf32>
    tpu.vector_store %arg6[%c160, %c0_34], %58 {strides = array<i32>} : memref<288x256xf32, #tpu.memory_space<vmem>>, vector<32x256xf32>,
    %c0_35 = arith.constant 0 : index
    %c143 = arith.constant 143 : index
    %60 = vector.load %arg5[%c0_35, %c143] : memref<32x512xf32, #tpu.memory_space<vmem>>, vector<32x256xf32>
    %cst_36 = arith.constant 0.000000e+00 : f32
    %61 = vector.shape_cast %22 : vector<1x256xi1> to vector<1x256xi1>
    %62 = vector.broadcast %61 : vector<1x256xi1> to vector<32x256xi1>
    %63 = vector.broadcast %cst_36 : f32 to vector<32x256xf32>
    %64 = arith.select %62, %60, %63 : vector<32x256xi1>, vector<32x256xf32>
    %c192 = arith.constant 192 : index
    %c0_37 = arith.constant 0 : index
    %65 = vector.load %arg6[%c192, %c0_37] : memref<288x256xf32, #tpu.memory_space<vmem>>, vector<32x256xf32>
    tpu.vector_store %arg6[%c192, %c0_37], %64 {strides = array<i32>} : memref<288x256xf32, #tpu.memory_space<vmem>>, vector<32x256xf32>,
    %c0_38 = arith.constant 0 : index
    %c144 = arith.constant 144 : index
    %66 = vector.load %arg5[%c0_38, %c144] : memref<32x512xf32, #tpu.memory_space<vmem>>, vector<32x256xf32>
    %c224 = arith.constant 224 : index
    %c0_39 = arith.constant 0 : index
    %67 = vector.load %arg6[%c224, %c0_39] : memref<288x256xf32, #tpu.memory_space<vmem>>, vector<32x256xf32>
    tpu.vector_store %arg6[%c224, %c0_39], %66 {strides = array<i32>} : memref<288x256xf32, #tpu.memory_space<vmem>>, vector<32x256xf32>,
    %c0_40 = arith.constant 0 : index
    %c145 = arith.constant 145 : index
    %68 = vector.load %arg5[%c0_40, %c145] : memref<32x512xf32, #tpu.memory_space<vmem>>, vector<32x256xf32>
    %cst_41 = arith.constant 0.000000e+00 : f32
    %69 = vector.shape_cast %24 : vector<1x256xi1> to vector<1x256xi1>
    %70 = vector.broadcast %69 : vector<1x256xi1> to vector<32x256xi1>
    %71 = vector.broadcast %cst_41 : f32 to vector<32x256xf32>
    %72 = arith.select %70, %68, %71 : vector<32x256xi1>, vector<32x256xf32>
    %c256 = arith.constant 256 : index
    %c0_42 = arith.constant 0 : index
    %73 = vector.load %arg6[%c256, %c0_42] : memref<288x256xf32, #tpu.memory_space<vmem>>, vector<32x256xf32>
    tpu.vector_store %arg6[%c256, %c0_42], %72 {strides = array<i32>} : memref<288x256xf32, #tpu.memory_space<vmem>>, vector<32x256xf32>,
    %c0_43 = arith.constant 0 : index
    %c0_44 = arith.constant 0 : index
    %74 = vector.load %arg6[%c0_43, %c0_44] : memref<288x256xf32, #tpu.memory_space<vmem>>, vector<288x256xf32>
    %cst_45 = arith.constant dense<0.000000e+00> : vector<8x256xf32>
    %75 = tpu.matmul %25, %74, %cst_45 {dimension_numbers = #tpu.dot_dimension_numbers<[1], [0], [0], [1], [0, 0, 1, 1], [], []>} : vector<8x288xf32>, vector<288x256xf32>, vector<8x256xf32> -> vector<8x256xf32>
    %cst_46 = arith.constant 0.000000e+00 : f32
    %76 = vector.broadcast %cst_46 : f32 to vector<8x256xf32>
    %77 = arith.maximumf %75, %76 : vector<8x256xf32>
    %cst_47 = arith.constant dense<0.000000e+00> : vector<32x256xf32>
    %78 = tpu.matmul %26, %77, %cst_47 {dimension_numbers = #tpu.dot_dimension_numbers<[1], [0], [0], [1], [0, 0, 1, 1], [], []>} : vector<32x8xf32>, vector<8x256xf32>, vector<32x256xf32> -> vector<32x256xf32>
    %79 = arith.addf %28, %78 : vector<32x256xf32>
    %c0_48 = arith.constant 0 : index
    %c0_49 = arith.constant 0 : index
    %c0_50 = arith.constant 0 : index
    %80 = vector.load %arg4[%c0_48, %c0_49, %c0_50] : memref<1x32x256xf32, #tpu.memory_space<vmem>>, vector<1x32x256xf32>
    %81 = vector.shape_cast %80 : vector<1x32x256xf32> to vector<32x256xf32>
    %82 = vector.shape_cast %79 : vector<32x256xf32> to vector<1x32x256xf32>
    tpu.vector_store %arg4[%c0_48, %c0_49, %c0_50], %82 {strides = array<i32>} : memref<1x32x256xf32, #tpu.memory_space<vmem>>, vector<1x32x256xf32>,
    return
  }
  func.func @transform_0(%arg0: i32) -> (i32, i32, i32) {
    %c0_i32 = arith.constant 0 : i32
    %c0_i32_0 = arith.constant 0 : i32
    %c0_i32_1 = arith.constant 0 : i32
    return %arg0, %c0_i32, %c0_i32_0 : i32, i32, i32
  }
  func.func @transform_1(%arg0: i32) -> (i32, i32) {
    %c0_i32 = arith.constant 0 : i32
    %c0_i32_0 = arith.constant 0 : i32
    %c0_i32_1 = arith.constant 0 : i32
    return %c0_i32, %c0_i32_0 : i32, i32
  }
  func.func @transform_2(%arg0: i32) -> (i32, i32) {
    %c0_i32 = arith.constant 0 : i32
    %c0_i32_0 = arith.constant 0 : i32
    %c0_i32_1 = arith.constant 0 : i32
    return %c0_i32, %c0_i32_0 : i32, i32
  }
  func.func @transform_3(%arg0: i32) -> (i32, i32, i32) {
    %c0_i32 = arith.constant 0 : i32
    %c0_i32_0 = arith.constant 0 : i32
    %c0_i32_1 = arith.constant 0 : i32
    return %arg0, %c0_i32, %c0_i32_0 : i32, i32, i32
  }
}

</mosaic_0001>

<bundles_post_ra>
// kernel: residual_forward.1
= control target key start
LH: loop header
LB: loop body
LE: loop exit
PB: predicated region body
PF: predicated region fallthrough
CT: control target
= control target key end

     0   :  { %s1748_s12 = smov 0   ;;  %s2043_s0 = inlined_call_operand.vmem [shape: f32[2,32,256], index: 0, kind: input, shape index: {}]   ;;  %s2044_s1 = inlined_call_operand.vmem [shape: f32[8,288], index: 1, kind: input, shape index: {}]   ;;  %s2045_s2 = inlined_call_operand.vmem [shape: f32[32,8], index: 2, kind: input, shape index: {}]   ;;  %s2046_s3 = inlined_call_operand.vmem [shape: f32[2,32,256], index: 3, kind: output, shape index: {}]  }
   0x1 LB: > { %s1290_s13 = sadd.s32 4294967295, %s1717_s12   ;;  %p1294_p0 = scmp.ge.s32.totalorder %s1717_s12, 1  ;;  %s1717_s12 = sphi %s1748_s12, %s13_s12  }
   0x2   : > { %p137_p1 = scmp.lt.s32.totalorder %s1717_s12, 3 }
   0x4   : > { %p138_p2 = pnand %p1294_p0, %p137_p1 }
   0x5   : > { %p161_p3 = scmp.lt.s32.totalorder (!%p138_p2), %s1290_s13, 1  ;;  %v1719_v0 = vmov (!%p138_p2), 0.0   ;;  %s1720_s14 = smov (!%p138_p2), 17   ;;  %v211_v31 = vld [vmem:[%s2044_s1 + $0x8] sm:$0xff] (!%p138_p2)  ;;  %v179_v32 = vlaneseq (!%p138_p2)  ;;  %vm293_vm0 = vcmask (!%p138_p2), 138240   ;;  %vm374_vm5 = vcmask (!%p138_p2), 130048  }
   0x6   : > { %141 = sbr.rel (%p138_p2) target bundleno = 683 (0x2ab), region = 32  ;;  %1108 = vmatprep.mubr.f32.mxu1 (!%p138_p2), %v1719_v0  ;;  %1472 = vrot.lane.b32.xlu1 (!%p138_p2), %v1719_v0, %s1720_s14  ;;  %s1721_s19 = smov (!%p138_p2), 16   ;;  %vm451_vm6 = vcmask (!%p138_p2), 121856   ;;  %vm532_vm11 = vcmask (!%p138_p2), 7168   ;;  %vm629_vm12 = vcmask (!%p138_p2), 1039360   ;;  %vm710_vm13 = vcmask (!%p138_p2), 924672  }
   0x7   : > { %s1722_s20 = smov (!%p138_p2), 15   ;;  %s1723_s21 = smov (!%p138_p2), 1   ;;  %1037 = vmatprep.mubr.f32.mxu0 (!%p138_p2), %v211_v31  ;;  %v1850_v34 = vand.u32 (!%p138_p2), 127, %v179_v32  ;;  %vm791_vm14 = vcmask (!%p138_p2), 916480   ;;  %vm864_vm15 = vcmask (!%p138_p2), 908288  }
   0x8   : > { %s1724_s22 = smov (!%p138_p2), 127   ;;  %s1725_s23 = smov (!%p138_p2), 113  }
   0x9   : > { %s1726_s24 = smov (!%p138_p2), 112   ;;  %s1727_s25 = smov (!%p138_p2), 111   ;;  %v1853_v36 = vadd.s32 (!%p138_p2), 128, %v1850_v34  ;;  %v186_v40 = vand.u32 (!%p138_p2), 15, %v1850_v34 }
   0xa   : > { %1477 = vrot.lane.b32.xlu1 (!%p138_p2), %v1719_v0, %s1720_s14 }
   0xb   : > { %v193_v38 = vand.u32 (!%p138_p2), 15, %v1853_v36  ;;  %vm206_vm2 = vcmp.ge.s32.totalorder (!%p138_p2), %v186_v40, 1  ;;  %vm208_vm9 = vcmp.le.s32.totalorder (!%p138_p2), %v186_v40, 14 }
   0xc   : > { %vm1870_vm4 = vmpackc.low (!%p138_p2), %vm206_vm2, %vm206_vm2 }
   0xd   : > { %s2056_s13 = smov (!%p161_p3, %s1290_s13), 1  ;;  %vm207_vm1 = vcmp.ge.s32.totalorder %v193_v38, 1  ;;  %vm209_vm7 = vcmp.le.s32.totalorder %v193_v38, 14  ;;  %vm1907_vm10 = vmpackc.low %vm208_vm9, %vm208_vm9 }
   0xe   : > { %s1306_s15 = sshll.u32 %s2056_s13, 6  ;;  %vm1863_vm3 = vmpackc.low %vm207_vm1, %vm207_vm1  ;;  %vm1117_vm1 = vcmask 64512  }
   0xf   : > { %s165_s18 = scalar_lea.vmem %s2043_s0, %s1306_s15  ;;  %vm1897_vm8 = vmpackc.low %vm209_vm7, %vm209_vm7 }
  0x10   : > { %v1767_v1 = vld [vmem:[%s165_s18] sm:$0xff]  ;;  %v1769_v2 = vld [vmem:[%s165_s18 + $0x8] sm:$0xff]  ;;  %v1786_v8 = vld [vmem:[%s165_s18 + $0x10] sm:$0xff] }
  0x11   : > { %v1771_v3 = vld [vmem:[%s165_s18 + $0x20] sm:$0xff]  ;;  %v1776_v4 = vmax.f32 %v1767_v1, 0.0  ;;  %v1779_v5 = vmax.f32 %v1769_v2, 0.0  ;;  %v1781_v6 = vld [vmem:[%s165_s18 + $0x28] sm:$0xff]  ;;  %v1788_v9 = vld [vmem:[%s165_s18 + $0x18] sm:$0xff]  ;;  %v1794_v11 = vmax.f32 %v1786_v8, 0.0 }
  0x12   : > { %v1784_v7 = vmax.f32 %v1771_v3, 0.0  ;;  %v1791_v10 = vmax.f32 %v1781_v6, 0.0  ;;  %v1797_v12 = vmax.f32 %v1788_v9, 0.0  ;;  %v1799_v13 = vld [vmem:[%s165_s18 + $0x30] sm:$0xff]  ;;  %v1801_v14 = vld [vmem:[%s165_s18 + $0x38] sm:$0xff]  ;;  %s170_s18 = scalar_lea.vmem %s2046_s3, %s1306_s15 }
  0x13   : > { %v1481_v15 = vpack.i.bf16 %v1779_v5, %v1776_v4  ;;  %v1811_v18 = vmax.f32 %v1799_v13, 0.0  ;;  %v1814_v19 = vmax.f32 %v1801_v14, 0.0  ;;  %v1676_v21 = vpack.i.bf16 %v1794_v11, %v1776_v4 }
  0x14   : > { %v1491_v16 = vpack.i.bf16 %v1791_v10, %v1784_v7  ;;  %v1486_v17 = vpack.i.bf16 %v1797_v12, %v1794_v11  ;;  %v1596_v23 = vpack.i.bf16 %v1719_v0, %v1797_v12  ;;  %v1400_v24 = vpack.c.bf16 %v1797_v12, %v1779_v5 }
  0x15   : > { %1482 = vrot.lane.b32.xlu0 %v1481_v15, %s1720_s14  ;;  %v1496_v20 = vpack.i.bf16 %v1814_v19, %v1811_v18  ;;  %v1706_v22 = vpack.i.bf16 %v1811_v18, %v1784_v7  ;;  %v1402_v25 = vpack.c.bf16 %v1794_v11, %v1776_v4  ;;  %v1606_v26 = vpack.i.bf16 %v1719_v0, %v1791_v10 }
  0x16   : > { %1492 = vrot.lane.b32.xlu1 %v1491_v16, %s1720_s14  ;;  %v1404_v27 = vpack.c.bf16 %v1814_v19, %v1791_v10  ;;  %v1406_v28 = vpack.c.bf16 %v1811_v18, %v1784_v7  ;;  %v1591_v29 = vpack.i.bf16 %v1719_v0, %v1779_v5  ;;  %v1611_v30 = vpack.i.bf16 %v1719_v0, %v1814_v19 }
  0x19   : > { %1487 = vrot.lane.b32.xlu0 %v1486_v17, %s1720_s14 }
  0x1a   : > { %1507 = vrot.lane.b32.xlu1 %v1486_v17, %s1721_s19 }
  0x1d   : > { %1497 = vrot.lane.b32.xlu0 %v1496_v20, %s1720_s14 }
  0x1e   : > { %1517 = vrot.lane.b32.xlu1 %v1491_v16, %s1721_s19 }
  0x21   : > { %1502 = vrot.lane.b32.xlu0 %v1481_v15, %s1721_s19 }
  0x22   : > { %1527 = vrot.lane.b32.xlu1 %v1719_v0, %s1721_s19 }
  0x25   : > { %1512 = vrot.lane.b32.xlu0 %v1719_v0, %s1721_s19 }
  0x26   : > { %1537 = vrot.lane.b32.xlu1 %v1486_v17, %s1722_s20 }
  0x29   : > { %1522 = vrot.lane.b32.xlu0 %v1496_v20, %s1721_s19 }
  0x2a   : > { %1547 = vrot.lane.b32.xlu1 %v1491_v16, %s1722_s20 }
  0x2d   : > { %1532 = vrot.lane.b32.xlu0 %v1481_v15, %s1722_s20 }
  0x2e   : > { %1557 = vrot.lane.b32.xlu1 %v1719_v0, %s1722_s20 }
  0x31   : > { %1542 = vrot.lane.b32.xlu0 %v1719_v0, %s1722_s20 }
  0x32   : > { %1567 = vrot.lane.b32.xlu1 %v1486_v17, %s1723_s21 }
  0x35   : > { %1552 = vrot.lane.b32.xlu0 %v1496_v20, %s1722_s20 }
  0x36   : > { %1577 = vrot.lane.b32.xlu1 %v1491_v16, %s1723_s21 }
  0x39   : > { %1562 = vrot.lane.b32.xlu0 %v1481_v15, %s1723_s21 }
  0x3a   : > { %1587 = vrot.lane.b32.xlu1 %v1719_v0, %s1723_s21 }
  0x3d   : > { %1572 = vrot.lane.b32.xlu0 %v1719_v0, %s1723_s21 }
  0x3e   : > { %1597 = vrot.lane.b32.xlu1 %v1596_v23, %s1724_s22 }
  0x41   : > { %1582 = vrot.lane.b32.xlu0 %v1496_v20, %s1723_s21 }
  0x42   : > { %1607 = vrot.lane.b32.xlu1 %v1606_v26, %s1724_s22 }
  0x45   : > { %1592 = vrot.lane.b32.xlu0 %v1591_v29, %s1724_s22 }
  0x46   : > { %1617 = vrot.lane.b32.xlu1 %v1706_v22, %s1724_s22 }
  0x49   : > { %1602 = vrot.lane.b32.xlu0 %v1676_v21, %s1724_s22 }
  0x4a   : > { %1627 = vrot.lane.b32.xlu1 %v1596_v23, %s1725_s23 }
  0x4d   : > { %1612 = vrot.lane.b32.xlu0 %v1611_v30, %s1724_s22 }
  0x4e   : > { %1637 = vrot.lane.b32.xlu1 %v1606_v26, %s1725_s23 }
  0x51   : > { %1622 = vrot.lane.b32.xlu0 %v1591_v29, %s1725_s23 }
  0x52   : > { %1647 = vrot.lane.b32.xlu1 %v1706_v22, %s1725_s23 }
  0x55   : > { %1632 = vrot.lane.b32.xlu0 %v1676_v21, %s1725_s23 }
  0x56   : > { %1657 = vrot.lane.b32.xlu1 %v1596_v23, %s1726_s24 }
  0x59   : > { %1642 = vrot.lane.b32.xlu0 %v1611_v30, %s1725_s23 }
  0x5a   : > { %1667 = vrot.lane.b32.xlu1 %v1596_v23, %s1727_s25 }
  0x5d   : > { %1652 = vrot.lane.b32.xlu0 %v1591_v29, %s1726_s24 }
  0x5e   : > { %1677 = vrot.lane.b32.xlu1 %v1676_v21, %s1727_s25 }
  0x61   : > { %1662 = vrot.lane.b32.xlu0 %v1591_v29, %s1727_s25 }
  0x62   : > { %1687 = vrot.lane.b32.xlu1 %v1611_v30, %s1726_s24 }
  0x65   : > { %1672 = vrot.lane.b32.xlu0 %v1676_v21, %s1726_s24 }
  0x66   : > { %1697 = vrot.lane.b32.xlu1 %v1611_v30, %s1727_s25 }
  0x69   : > { %1682 = vrot.lane.b32.xlu0 %v1606_v26, %s1726_s24 }
  0x6a   : > { %1707 = vrot.lane.b32.xlu1 %v1706_v22, %s1727_s25 }
  0x6d   : > { %1692 = vrot.lane.b32.xlu0 %v1606_v26, %s1727_s25 }
  0x71   : > { %1702 = vrot.lane.b32.xlu0 %v1706_v22, %s1726_s24 }
  0x78   : > { %v1473_v33 = vpop.permute.xlu1 %1472 }
  0x79   : > { %v1474_v41 = vunpack.i.l.bf16 %v1473_v33  ;;  %v1475_v46 = vunpack.i.h.bf16 %v1473_v33 }
  0x7c   : > { %v1478_v35 = vpop.permute.xlu1 %1477 }
  0x7d   : > { %v1479_v50 = vunpack.i.l.bf16 %v1478_v35  ;;  %v1480_v57 = vunpack.i.h.bf16 %v1478_v35 }
  0x87   : > { %v1483_v37 = vpop.permute.xlu0 %1482 }
  0x88   : > { %v1493_v39 = vpop.permute.xlu1 %1492  ;;  %v1485_v42 = vunpack.i.h.bf16 %v1483_v37  ;;  %v1484_v43 = vunpack.i.l.bf16 %v1483_v37 }
  0x89   : > { %v1495_v44 = vunpack.i.h.bf16 %v1493_v39  ;;  %v1494_v51 = vunpack.i.l.bf16 %v1493_v39 }
  0x8a   : > { %v295_v52 = vsel %vm293_vm0, %v1484_v43, %v1485_v42  ;;  %v294_v55 = vsel %vm293_vm0, %v1474_v41, %v1484_v43 }
  0x8b   : > { %v1488_v45 = vpop.permute.xlu0 %1487  ;;  %v299_v58 = vsel %vm293_vm0, %v1494_v51, %v1495_v44  ;;  %v298_v21 = vsel %vm293_vm0, %v1479_v50, %v1494_v51 }
  0x8c   : > { %v1490_v47 = vunpack.i.h.bf16 %v1488_v45  ;;  %v1489_v48 = vunpack.i.l.bf16 %v1488_v45  ;;  %v1508_v49 = vpop.permute.xlu1 %1507 }
  0x8d   : > { %v1510_v63 = vunpack.i.h.bf16 %v1508_v49  ;;  %v1509_v15 = vunpack.i.l.bf16 %v1508_v49 }
  0x8e   : > { %v297_v53 = vsel %vm293_vm0, %v1489_v48, %v1490_v47  ;;  %v296_v56 = vsel %vm293_vm0, %v1475_v46, %v1489_v48 }
  0x8f   : > { %v1498_v59 = vpop.permute.xlu0 %1497  ;;  %v1356_v60 = vpack.c.bf16 %v297_v53, %v295_v52  ;;  %v1359_v61 = vpack.c.bf16 %v296_v56, %v294_v55  ;;  %v378_v35 = vsel %vm374_vm5, %v1509_v15, %v1510_v63 }
  0x90   : > { %v1500_v16 = vunpack.i.h.bf16 %v1498_v59  ;;  %v1499_v17 = vunpack.i.l.bf16 %v1498_v59  ;;  %v1518_v20 = vpop.permute.xlu1 %1517 }
  0x91   : > { %1358 = vmatprep.subr.msk.bf16.mxu0 %vm1863_vm3, %v1356_v60  ;;  %v1520_v45 = vunpack.i.h.bf16 %v1518_v20  ;;  %v1519_v46 = vunpack.i.l.bf16 %v1518_v20 }
  0x92   : > { %v300_v22 = vsel %vm293_vm0, %v1480_v57, %v1499_v17  ;;  %v301_v23 = vsel %vm293_vm0, %v1499_v17, %v1500_v16  ;;  %1361 = vmatpush1.bf16.msk.msra.mxu0 %vm1870_vm4, %v1359_v61  ;;  %vm969_vm0 = vcmask 261120  }
  0x93   : > { %v1362_v26 = vpack.c.bf16 %v301_v23, %v299_v58  ;;  %v1365_v29 = vpack.c.bf16 %v300_v22, %v298_v21  ;;  %v1503_v30 = vpop.permute.xlu0 %1502  ;;  %v380_v59 = vsel %vm374_vm5, %v1519_v46, %v1520_v45 }
  0x94   : > { %v1505_v31 = vunpack.i.h.bf16 %v1503_v30  ;;  %v1504_v32 = vunpack.i.l.bf16 %v1503_v30  ;;  %v1528_v33 = vpop.permute.xlu1 %1527 }
  0x95   : > { %1364 = vmatprep.subr.msk.bf16.mxu0 %vm1863_vm3, %v1362_v26  ;;  %v1530_v47 = vunpack.i.h.bf16 %v1528_v33  ;;  %v1529_v48 = vunpack.i.l.bf16 %v1528_v33 }
  0x96   : > { %1367 = vmatpush1.bf16.msk.msra.mxu0 %vm1870_vm4, %v1365_v29  ;;  %v376_v37 = vsel %vm374_vm5, %v1504_v32, %v1505_v31  ;;  %v210_v29 = vld [vmem:[%s2044_s1] sm:$0xff] }
  0x97   : > { %v1513_v39 = vpop.permute.xlu0 %1512  ;;  %v1368_v41 = vpack.c.bf16 %v378_v35, %v376_v37  ;;  %v379_v61 = vsel %vm374_vm5, %v1529_v48, %v1519_v46 }
  0x98   : > { %v1515_v42 = vunpack.i.h.bf16 %v1513_v39  ;;  %v1514_v43 = vunpack.i.l.bf16 %v1513_v39  ;;  %v1538_v44 = vpop.permute.xlu1 %1537 }
  0x99   : > { %1369 = vmatprep.subr.bf16.mxu0 %v1368_v41  ;;  %v1540_v53 = vunpack.i.h.bf16 %v1538_v44  ;;  %v1539_v55 = vunpack.i.l.bf16 %v1538_v44 }
  0x9a   : > { %v375_v49 = vsel %vm374_vm5, %v1514_v43, %v1504_v32  ;;  %v377_v50 = vsel %vm374_vm5, %v1515_v42, %v1509_v15 }
  0x9b   : > { %v1523_v51 = vpop.permute.xlu0 %1522  ;;  %v1370_v52 = vpack.c.bf16 %v377_v50, %v375_v49  ;;  %v455_v20 = vsel %vm451_vm6, %v1539_v55, %v1540_v53 }
  0x9c   : > { %v1525_v56 = vunpack.i.h.bf16 %v1523_v51  ;;  %v1524_v57 = vunpack.i.l.bf16 %v1523_v51  ;;  %v1548_v58 = vpop.permute.xlu1 %1547 }
  0x9d   : > { %1371 = vmatpush1.bf16.msra.mxu0 %v1370_v52  ;;  %v1550_v33 = vunpack.i.h.bf16 %v1548_v58  ;;  %v1549_v35 = vunpack.i.l.bf16 %v1548_v58 }
  0x9e   : > { %v382_v60 = vsel %vm374_vm5, %v1524_v57, %v1525_v56  ;;  %v381_v63 = vsel %vm374_vm5, %v1530_v47, %v1524_v57 }
  0x9f   : > { %v1533_v16 = vpop.permute.xlu0 %1532  ;;  %v1372_v17 = vpack.c.bf16 %v382_v60, %v380_v59  ;;  %v1374_v15 = vpack.c.bf16 %v381_v63, %v379_v61  ;;  %v457_v49 = vsel %vm451_vm6, %v1549_v35, %v1550_v33 }
  0xa0   : > { %v1535_v21 = vunpack.i.h.bf16 %v1533_v16  ;;  %v1534_v22 = vunpack.i.l.bf16 %v1533_v16  ;;  %v1558_v23 = vpop.permute.xlu1 %1557 }
  0xa1   : > { %1373 = vmatprep.subr.bf16.mxu0 %v1372_v17  ;;  %v1560_v37 = vunpack.i.h.bf16 %v1558_v23  ;;  %v1559_v39 = vunpack.i.l.bf16 %v1558_v23 }
  0xa2   : > { %v453_v26 = vsel %vm451_vm6, %v1534_v22, %v1535_v21  ;;  %1375 = vmatpush1.bf16.msra.mxu0 %v1374_v15 }
  0xa3   : > { %v1376_v30 = vpack.c.bf16 %v455_v20, %v453_v26  ;;  %v1543_v31 = vpop.permute.xlu0 %1542  ;;  %v456_v50 = vsel %vm451_vm6, %v1559_v39, %v1549_v35 }
  0xa4   : > { %v1545_v36 = vunpack.i.h.bf16 %v1543_v31  ;;  %v1544_v38 = vunpack.i.l.bf16 %v1543_v31  ;;  %v1568_v32 = vpop.permute.xlu1 %1567 }
  0xa5   : > { %1378 = vmatprep.subr.msk.bf16.mxu0 %vm1897_vm8, %v1376_v30  ;;  %v1570_v44 = vunpack.i.h.bf16 %v1568_v32  ;;  %v1569_v45 = vunpack.i.l.bf16 %v1568_v32 }
  0xa6   : > { %v454_v41 = vsel %vm451_vm6, %v1545_v36, %v1539_v55  ;;  %v452_v42 = vsel %vm451_vm6, %v1544_v38, %v1534_v22 }
  0xa7   : > { %v1379_v34 = vpack.c.bf16 %v454_v41, %v452_v42  ;;  %v1553_v40 = vpop.permute.xlu0 %1552  ;;  %v536_v57 = vsel %vm532_vm11, %v1569_v45, %v1570_v44 }
  0xa8   : > { %v1555_v46 = vunpack.i.h.bf16 %v1553_v40  ;;  %v1554_v47 = vunpack.i.l.bf16 %v1553_v40  ;;  %v1578_v48 = vpop.permute.xlu1 %1577 }
  0xa9   : > { %1381 = vmatpush1.bf16.msk.msra.mxu0 %vm1907_vm10, %v1379_v34  ;;  %v1580_v21 = vunpack.i.h.bf16 %v1578_v48  ;;  %v1579_v22 = vunpack.i.l.bf16 %v1578_v48 }
  0xaa   : > { %v458_v51 = vsel %vm451_vm6, %v1560_v37, %v1554_v47  ;;  %v459_v52 = vsel %vm451_vm6, %v1554_v47, %v1555_v46 }
  0xab   : > { %v1382_v53 = vpack.c.bf16 %v459_v52, %v457_v49  ;;  %v1385_v55 = vpack.c.bf16 %v458_v51, %v456_v50  ;;  %v1563_v56 = vpop.permute.xlu0 %1562  ;;  %v538_v37 = vsel %vm532_vm11, %v1579_v22, %v1580_v21 }
  0xac   : > { %v1565_v58 = vunpack.i.h.bf16 %v1563_v56  ;;  %v1564_v59 = vunpack.i.l.bf16 %v1563_v56  ;;  %v1588_v60 = vpop.permute.xlu1 %1587 }
  0xad   : > { %1384 = vmatprep.subr.msk.bf16.mxu0 %vm1897_vm8, %v1382_v53  ;;  %v1590_v23 = vunpack.i.h.bf16 %v1588_v60  ;;  %v1589_v26 = vunpack.i.l.bf16 %v1588_v60 }
  0xae   : > { %v534_v61 = vsel %vm532_vm11, %v1564_v59, %v1565_v58  ;;  %1387 = vmatpush1.bf16.msk.msra.mxu0 %vm1907_vm10, %v1385_v55 }
  0xaf   : > { %v1388_v63 = vpack.c.bf16 %v536_v57, %v534_v61  ;;  %v1573_v16 = vpop.permute.xlu0 %1572  ;;  %v537_v39 = vsel %vm532_vm11, %v1589_v26, %v1579_v22 }
  0xb0   : > { %v1575_v17 = vunpack.i.h.bf16 %v1573_v16  ;;  %v1574_v15 = vunpack.i.l.bf16 %v1573_v16  ;;  %v1598_v20 = vpop.permute.xlu1 %1597 }
  0xb1   : > { %1390 = vmatprep.subr.msk.bf16.mxu0 %vm1863_vm3, %v1388_v63  ;;  %v1600_v46 = vunpack.i.h.bf16 %v1598_v20  ;;  %v1599_v47 = vunpack.i.l.bf16 %v1598_v20 }
  0xb2   : > { %v535_v30 = vsel %vm532_vm11, %v1575_v17, %v1569_v45  ;;  %v533_v31 = vsel %vm532_vm11, %v1574_v15, %v1564_v59 }
  0xb3   : > { %v1391_v36 = vpack.c.bf16 %v535_v30, %v533_v31  ;;  %v1583_v38 = vpop.permute.xlu0 %1582  ;;  %v633_v55 = vsel %vm629_vm12, %v1599_v47, %v1600_v46 }
  0xb4   : > { %v1585_v32 = vunpack.i.h.bf16 %v1583_v38  ;;  %v1584_v33 = vunpack.i.l.bf16 %v1583_v38  ;;  %v1608_v35 = vpop.permute.xlu1 %1607 }
  0xb5   : > { %1393 = vmatpush1.bf16.msk.msra.mxu0 %vm1870_vm4, %v1391_v36  ;;  %v1610_v58 = vunpack.i.h.bf16 %v1608_v35  ;;  %v1609_v59 = vunpack.i.l.bf16 %v1608_v35 }
  0xb6   : > { %v539_v41 = vsel %vm532_vm11, %v1590_v23, %v1584_v33  ;;  %v540_v42 = vsel %vm532_vm11, %v1584_v33, %v1585_v32 }
  0xb7   : > { %v1394_v34 = vpack.c.bf16 %v540_v42, %v538_v37  ;;  %v1397_v40 = vpack.c.bf16 %v539_v41, %v537_v39  ;;  %v1593_v44 = vpop.permute.xlu0 %1592  ;;  %v635_v19 = vsel %vm629_vm12, %v1609_v59, %v1610_v58 }
  0xb8   : > { %v1618_v45 = vpop.permute.xlu1 %1617  ;;  %v1595_v48 = vunpack.i.h.bf16 %v1593_v44  ;;  %v1594_v49 = vunpack.i.l.bf16 %v1593_v44 }
  0xb9   : > { %1396 = vmatprep.subr.msk.bf16.mxu0 %vm1863_vm3, %v1394_v34  ;;  %v1620_v61 = vunpack.i.h.bf16 %v1618_v45  ;;  %v1619_v10 = vunpack.i.l.bf16 %v1618_v45 }
  0xba   : > { %1399 = vmatpush1.bf16.msk.msra.mxu0 %vm1870_vm4, %v1397_v40  ;;  %v631_v56 = vsel %vm629_vm12, %v1594_v49, %v1595_v48 }
  0xbb   : > { %v1603_v50 = vpop.permute.xlu0 %1602  ;;  %1401 = vmatprep.subr.bf16.mxu0 %v1400_v24  ;;  %v1408_v60 = vpack.c.bf16 %v633_v55, %v631_v56  ;;  %v634_v18 = vsel %vm629_vm12, %v1619_v10, %v1609_v59 }
  0xbc   : > { %v1628_v51 = vpop.permute.xlu1 %1627  ;;  %v1605_v52 = vunpack.i.h.bf16 %v1603_v50  ;;  %v1604_v53 = vunpack.i.l.bf16 %v1603_v50 }
  0xbd   : > { %v1630_v17 = vunpack.i.h.bf16 %v1628_v51  ;;  %v1629_v15 = vunpack.i.l.bf16 %v1628_v51 }
  0xbe   : > { %1403 = vmatpush1.bf16.msra.mxu0 %v1402_v25  ;;  %v632_v63 = vsel %vm629_vm12, %v1605_v52, %v1599_v47  ;;  %v630_v16 = vsel %vm629_vm12, %v1604_v53, %v1594_v49 }
  0xbf   : > { %v1613_v57 = vpop.permute.xlu0 %1612  ;;  %1405 = vmatprep.subr.bf16.mxu0 %v1404_v27  ;;  %v1411_v25 = vpack.c.bf16 %v632_v63, %v630_v16  ;;  %v714_v26 = vsel %vm710_vm13, %v1629_v15, %v1630_v17 }
  0xc0   : > { %v1615_v5 = vunpack.i.h.bf16 %v1613_v57  ;;  %v1614_v12 = vunpack.i.l.bf16 %v1613_v57  ;;  %v1638_v24 = vpop.permute.xlu1 %1637 }
  0xc1   : > { %v1640_v32 = vunpack.i.h.bf16 %v1638_v24  ;;  %v1639_v33 = vunpack.i.l.bf16 %v1638_v24 }
  0xc2   : > { %v637_v4 = vsel %vm629_vm12, %v1614_v12, %v1615_v5  ;;  %1407 = vmatpush1.bf16.msra.mxu0 %v1406_v28  ;;  %v636_v22 = vsel %vm629_vm12, %v1620_v61, %v1614_v12 }
  0xc3   : > { %v1623_v11 = vpop.permute.xlu0 %1622  ;;  %1410 = vmatprep.subr.msk.bf16.mxu0 %vm1897_vm8, %v1408_v60  ;;  %v1414_v23 = vpack.c.bf16 %v637_v4, %v635_v19  ;;  %v1417_v30 = vpack.c.bf16 %v636_v22, %v634_v18  ;;  %v716_v49 = vsel %vm710_vm13, %v1639_v33, %v1640_v32 }
  0xc4   : > { %v1625_v27 = vunpack.i.h.bf16 %v1623_v11  ;;  %v1624_v20 = vunpack.i.l.bf16 %v1623_v11  ;;  %v1648_v21 = vpop.permute.xlu1 %1647 }
  0xc5   : > { %v1650_v37 = vunpack.i.h.bf16 %v1648_v21  ;;  %v1649_v39 = vunpack.i.l.bf16 %v1648_v21 }
  0xc6   : > { %v712_v7 = vsel %vm710_vm13, %v1624_v20, %v1625_v27  ;;  %1413 = vmatpush1.bf16.msk.msra.mxu0 %vm1907_vm10, %v1411_v25 }
  0xc7   : > { %v1633_v28 = vpop.permute.xlu0 %1632  ;;  %1416 = vmatprep.subr.msk.bf16.mxu0 %vm1897_vm8, %v1414_v23  ;;  %v1420_v35 = vpack.c.bf16 %v714_v26, %v712_v7  ;;  %v715_v50 = vsel %vm710_vm13, %v1649_v39, %v1639_v33 }
  0xc8   : > { %v1635_v31 = vunpack.i.h.bf16 %v1633_v28  ;;  %v1634_v36 = vunpack.i.l.bf16 %v1633_v28  ;;  %v1658_v38 = vpop.permute.xlu1 %1657 }
  0xc9   : > { %v1660_v40 = vunpack.i.h.bf16 %v1658_v38  ;;  %v1659_v44 = vunpack.i.l.bf16 %v1658_v38 }
  0xca   : > { %v713_v41 = vsel %vm710_vm13, %v1635_v31, %v1629_v15  ;;  %v711_v42 = vsel %vm710_vm13, %v1634_v36, %v1624_v20  ;;  %1419 = vmatpush1.bf16.msk.msra.mxu0 %vm1907_vm10, %v1417_v30 }
  0xcb   : > { %v1423_v34 = vpack.c.bf16 %v713_v41, %v711_v42  ;;  %v1643_v45 = vpop.permute.xlu0 %1642  ;;  %1422 = vmatprep.subr.msk.bf16.mxu0 %vm1863_vm3, %v1420_v35  ;;  %v795_v57 = vsel %vm791_vm14, %v1659_v44, %v1660_v40 }
  0xcc   : > { %v1645_v46 = vunpack.i.h.bf16 %v1643_v45  ;;  %v1644_v47 = vunpack.i.l.bf16 %v1643_v45  ;;  %v1668_v48 = vpop.permute.xlu1 %1667 }
  0xcd   : > { %v1670_v58 = vunpack.i.h.bf16 %v1668_v48  ;;  %v1669_v59 = vunpack.i.l.bf16 %v1668_v48 }
  0xce   : > { %v717_v51 = vsel %vm710_vm13, %v1650_v37, %v1644_v47  ;;  %v718_v52 = vsel %vm710_vm13, %v1644_v47, %v1645_v46  ;;  %1425 = vmatpush1.bf16.msk.msra.mxu0 %vm1870_vm4, %v1423_v34 }
  0xcf   : > { %v1426_v53 = vpack.c.bf16 %v718_v52, %v716_v49  ;;  %v1429_v55 = vpack.c.bf16 %v717_v51, %v715_v50  ;;  %v1653_v56 = vpop.permute.xlu0 %1652  ;;  %v868_v11 = vsel %vm864_vm15, %v1669_v59, %v1670_v58  ;;  %v212_v58 = vld [vmem:[%s2044_s1 + $0x10] sm:$0xff] }
  0xd0   : > { %v1655_v5 = vunpack.i.h.bf16 %v1653_v56  ;;  %v1654_v12 = vunpack.i.l.bf16 %v1653_v56  ;;  %v1678_v24 = vpop.permute.xlu1 %1677 }
  0xd1   : > { %1428 = vmatprep.subr.msk.bf16.mxu0 %vm1863_vm3, %v1426_v53  ;;  %v1680_v60 = vunpack.i.h.bf16 %v1678_v24  ;;  %v1679_v61 = vunpack.i.l.bf16 %v1678_v24 }
  0xd2   : > { %1431 = vmatpush1.bf16.msk.msra.mxu0 %vm1870_vm4, %v1429_v55  ;;  %v793_v63 = vsel %vm791_vm14, %v1654_v12, %v1655_v5 }
  0xd3   : > { %v1663_v16 = vpop.permute.xlu0 %1662  ;;  %v1432_v17 = vpack.c.bf16 %v795_v57, %v793_v63  ;;  %v867_v19 = vsel %vm864_vm15, %v1680_v60, %v1669_v59 }
  0xd4   : > { %v1665_v15 = vunpack.i.h.bf16 %v1663_v16  ;;  %v1664_v4 = vunpack.i.l.bf16 %v1663_v16  ;;  %v1688_v10 = vpop.permute.xlu1 %1687 }
  0xd5   : > { %1433 = vmatprep.subr.bf16.mxu0 %v1432_v17  ;;  %v1690_v27 = vunpack.i.h.bf16 %v1688_v10  ;;  %v1689_v62 = vunpack.i.l.bf16 %v1688_v10  ;;  %v213_v17 = vld [vmem:[%s2045_s2] sm:$0xff]  ;;  %v216_v10 = vld [vmem:[%s2045_s2 + $0x18] sm:$0xff] }
  0xd6   : > { %v866_v54 = vsel %vm864_vm15, %v1664_v4, %v1665_v15  ;;  %v865_v25 = vsel %vm864_vm15, %v1679_v61, %v1664_v4  ;;  %v214_v15 = vld [vmem:[%s2045_s2 + $0x8] sm:$0xff]  ;;  %v215_v4 = vld [vmem:[%s2045_s2 + $0x10] sm:$0xff] }
  0xd7   : > { %v1673_v20 = vpop.permute.xlu0 %1672  ;;  %v1440_v21 = vpack.c.bf16 %v868_v11, %v866_v54  ;;  %v1443_v22 = vpack.c.bf16 %v867_v19, %v865_v25  ;;  %v799_v36 = vsel %vm791_vm14, %v1689_v62, %v1690_v27 }
  0xd8   : > { %v1675_v23 = vunpack.i.h.bf16 %v1673_v20  ;;  %v1674_v26 = vunpack.i.l.bf16 %v1673_v20  ;;  %v1698_v7 = vpop.permute.xlu1 %1697 }
  0xd9   : > { %1442 = vmatprep.subr.msk.bf16.mxu1 %vm1897_vm8, %v1440_v21  ;;  %v1700_v38 = vunpack.i.h.bf16 %v1698_v7  ;;  %v1699_v32 = vunpack.i.l.bf16 %v1698_v7 }
  0xda   : > { %1445 = vmatpush1.bf16.msk.msra.mxu1 %vm1907_vm10, %v1443_v22  ;;  %v792_v18 = vsel %vm791_vm14, %v1674_v26, %v1654_v12  ;;  %v794_v28 = vsel %vm791_vm14, %v1675_v23, %v1659_v44 }
  0xdb   : > { %v1683_v30 = vpop.permute.xlu0 %1682  ;;  %v1434_v31 = vpack.c.bf16 %v794_v28, %v792_v18  ;;  %v872_v45 = vsel %vm864_vm15, %v1699_v32, %v1700_v38 }
  0xdc   : > { %v1685_v33 = vunpack.i.h.bf16 %v1683_v30  ;;  %v1684_v35 = vunpack.i.l.bf16 %v1683_v30  ;;  %v1708_v37 = vpop.permute.xlu1 %1707 }
  0xdd   : > { %1435 = vmatpush1.bf16.msra.mxu0 %v1434_v31  ;;  %v1710_v39 = vunpack.i.h.bf16 %v1708_v37  ;;  %v1709_v41 = vunpack.i.l.bf16 %v1708_v37 }
  0xde   : > { %v797_v42 = vsel %vm791_vm14, %v1684_v35, %v1685_v33 }
  0xdf   : > { %v1693_v34 = vpop.permute.xlu0 %1692  ;;  %v1436_v40 = vpack.c.bf16 %v799_v36, %v797_v42  ;;  %v871_v44 = vsel %vm864_vm15, %v1710_v39, %v1699_v32 }
  0xe0   : > { %v1695_v46 = vunpack.i.h.bf16 %v1693_v34  ;;  %v1694_v47 = vunpack.i.l.bf16 %v1693_v34 }
  0xe1   : > { %1437 = vmatprep.subr.bf16.mxu0 %v1436_v40 }
  0xe2   : > { %v869_v48 = vsel %vm864_vm15, %v1709_v41, %v1694_v47  ;;  %v870_v49 = vsel %vm864_vm15, %v1694_v47, %v1695_v46 }
  0xe3   : > { %v1446_v50 = vpack.c.bf16 %v872_v45, %v870_v49  ;;  %v1449_v51 = vpack.c.bf16 %v871_v44, %v869_v48  ;;  %v1703_v52 = vpop.permute.xlu0 %1702 }
  0xe4   : > { %v1705_v53 = vunpack.i.h.bf16 %v1703_v52  ;;  %v1704_v55 = vunpack.i.l.bf16 %v1703_v52 }
  0xe5   : > { %1448 = vmatprep.subr.msk.bf16.mxu1 %vm1897_vm8, %v1446_v50 }
  0xe6   : > { %1451 = vmatpush1.bf16.msk.msra.mxu1 %vm1907_vm10, %v1449_v51  ;;  %v796_v56 = vsel %vm791_vm14, %v1704_v55, %v1684_v35  ;;  %v798_v57 = vsel %vm791_vm14, %v1705_v53, %v1689_v62 }
  0xe7   : > { %v1438_v59 = vpack.c.bf16 %v798_v57, %v796_v56 }
  0xe9   : > { %1439 = vmatpush1.bf16.msra.mxu0 %v1438_v59  ;;  %1299 = vmatmul.mubr.msk.f32.vlgmr.msra.gmra.mrb[0].mxu1 %vm969_vm0, %v212_v58 }
  0xea   : > { %1194 = vmatprep.mubr.f32.mxu1 %v1719_v0 }
  0xec   : > { %1038 = vmatmul.mubr.f32.vlgmr.msra.gmra.mrb[0].mxu0 %v210_v29 }
 0x1bc   : > { %v1110_v43 = vpop.f32.mrb[0].mxu1 }
 0x1bd   : > { %v1112_v5 = vpop.f32.mrb[1].mxu1 }
 0x1bf   : > { %v1039_v12 = vpop.f32.mrb[0].mxu0 }
 0x1c0   : > { %v1111_v24 = vadd.f32 %v1110_v43, %v1039_v12  ;;  %v1041_v60 = vpop.f32.mrb[1].mxu0 }
 0x1c1   : > { %v1113_v61 = vadd.f32 %v1112_v5, %v1041_v60 }
 0x1c2   : > { %v1115_v16 = vmax.f32 %v1111_v24, 0.0 }
 0x1c3   : > { %v1116_v63 = vmax.f32 %v1113_v61, 0.0 }
 0x1c5   : > { %1130 = vmatprep.subr.mxu1 %v1116_v63 }
 0x1c6   : > { %1131 = vmatpush1.msra.mxu1 %v1115_v16 }
 0x1c7   : > { %1300 = vmatmul.mubr.msk.f32.vlgmr.msra.gmra.mrb[2].mxu1 %vm1117_vm1, %v213_v17 }
 0x1c8   : > { %1200 = vmatprep.mubr.f32.mxu1 %v1719_v0 }
 0x1cb   : > { %1301 = vmatmul.mubr.msk.f32.gmra.mrb[4].mxu1 %vm1117_vm1, %v214_v15 }
 0x1cc   : > { %1206 = vmatprep.mubr.f32.mxu1 %v1719_v0 }
 0x1cf   : > { %1302 = vmatmul.mubr.msk.f32.gmra.mrb[6].mxu1 %vm1117_vm1, %v215_v4 }
 0x1d0   : > { %1212 = vmatprep.mubr.f32.mxu1 %v1719_v0 }
 0x1d3   : > { %1303 = vmatmul.mubr.msk.f32.gmra.mrb[8].mxu1 %vm1117_vm1, %v216_v10 }
 0x29a   : > { %v1196_v11 = vpop.f32.mrb[2].mxu1 }
 0x29b   : > { %v1219_v19 = vadd.f32 %v1196_v11, %v1767_v1  ;;  %v1198_v54 = vpop.f32.mrb[3].mxu1 }
 0x29c   : > { %v1220_v25 = vadd.f32 %v1198_v54, %v1769_v2 }
 0x29d   : > { %1227 = vst [vmem:[%s170_s18] sm:$0xff] %v1219_v19 }
 0x29e   : > { %1228 = vst [vmem:[%s170_s18 + $0x8] sm:$0xff] %v1220_v25  ;;  %v1202_v27 = vpop.f32.mrb[4].mxu1 }
 0x29f   : > { %v1221_v0 = vadd.f32 %v1202_v27, %v1786_v8  ;;  %v1204_v62 = vpop.f32.mrb[5].mxu1 }
 0x2a0   : > { %v1222_v20 = vadd.f32 %v1204_v62, %v1788_v9 }
 0x2a1   : > { %1229 = vst [vmem:[%s170_s18 + $0x10] sm:$0xff] %v1221_v0 }
 0x2a2   : > { %1230 = vst [vmem:[%s170_s18 + $0x18] sm:$0xff] %v1222_v20  ;;  %v1208_v21 = vpop.f32.mrb[6].mxu1 }
 0x2a3   : > { %v1223_v22 = vadd.f32 %v1208_v21, %v1771_v3  ;;  %v1210_v23 = vpop.f32.mrb[7].mxu1 }
 0x2a4   : > { %v1224_v26 = vadd.f32 %v1210_v23, %v1781_v6 }
 0x2a5   : > { %1231 = vst [vmem:[%s170_s18 + $0x20] sm:$0xff] %v1223_v22 }
 0x2a6   : > { %1232 = vst [vmem:[%s170_s18 + $0x28] sm:$0xff] %v1224_v26  ;;  %v1214_v1 = vpop.f32.mrb[8].mxu1 }
 0x2a7   : > { %v1225_v2 = vadd.f32 %v1214_v1, %v1799_v13  ;;  %v1216_v7 = vpop.f32.mrb[9].mxu1 }
 0x2a8   : > { %v1226_v18 = vadd.f32 %v1216_v7, %v1801_v14 }
 0x2a9   : > { %1233 = vst [vmem:[%s170_s18 + $0x30] sm:$0xff] %v1225_v2 }
 0x2aa   : > { %1234 = vst [vmem:[%s170_s18 + $0x38] sm:$0xff] %v1226_v18 }
 0x2ab PF: > { %s13_s12 = sadd.s32 1, %s1717_s12  }
 0x2ac   : > { %p10_p4 = scmp.ge.s32.totalorder %s13_s12, 4  }
 0x2ae   :  { %12 = sbr.rel (!%p10_p4) target bundleno = 1 (0x1), region = 62 }

</bundles_post_ra>
